<compile_context>
chip_gen: v7x
topology: tpu7x:2x2x1
jax: 0.10.0
libtpu: 0.0.40
codegen_flags: <defaults>
</compile_context>

<pallas_src>
import functools
import math

import jax
import jax.numpy as jnp
import numpy as np
from jax.experimental import pallas as pl
from jax.experimental.pallas import tpu as pltpu

_LOG_2PI = math.log(2.0 * math.pi)


def _sns_train_kernel(scale_ref, logalpha_ref, u_ref, theta_ref, gauss_ref,
                      out_ref, z_ref, qz_ref, logq_ref, *, beta):
    scale = scale_ref[...]          # (1, T) f32
    logalpha = logalpha_ref[...]    # (1, T) f32

    # zeta = exp(scale)+1, gamma = -exp(scale)
    es = jnp.exp(scale)
    gamma = -es
    span = 2.0 * es + 1.0                       # zeta - gamma
    log_ratio = jax.nn.log_sigmoid(scale)       # log(-gamma/zeta), stable

    qz_ref[...] = jax.nn.sigmoid(logalpha - beta * log_ratio)

    u = u_ref[...]                              # (R, T), uniform [0, 1)
    logit_u = jnp.log(u) - jnp.log1p(-u)        # no divide on the hot path
    s = jax.nn.sigmoid((logit_u + logalpha) * (1.0 / beta))
    z = jnp.clip(span * s + gamma, 0.0, 1.0)

    z_ref[...] = z
    out_ref[...] = z * theta_ref[...]

    g = gauss_ref[...]
    logq_ref[...] = (-0.5 * _LOG_2PI) - 0.5 * (g * g)


def _sns_eval_kernel(scale_ref, logalpha_ref, theta_ref, gauss_ref,
                     out_ref, z_ref, qz_ref, logq_ref, *, beta):
    scale = scale_ref[...]
    logalpha = logalpha_ref[...]

    es = jnp.exp(scale)
    gamma = -es
    span = 2.0 * es + 1.0
    log_ratio = jax.nn.log_sigmoid(scale)

    qz_ref[...] = jax.nn.sigmoid(logalpha - beta * log_ratio)

    # Deterministic gate: one (1, T) row, broadcast in the wrapper.
    z_det = jnp.clip(jax.nn.sigmoid(logalpha) * span + gamma, 0.0, 1.0)
    z_ref[...] = z_det
    out_ref[...] = z_det * theta_ref[...]

    g = gauss_ref[...]
    logq_ref[...] = (-0.5 * _LOG_2PI) - 0.5 * (g * g)


def _round_up(x, m):
    return (x + m - 1) // m * m


def spike_and_slab_forward(scale, logalpha, theta, gaussians, logdet, u=None,
                           *, training=True, beta=0.9, tile_p=2048):
    """Forward pass of SpikeAndSlabSampler (given slab samples theta/gaussians).

    Returns (out, theta, logq, logdet, z, qz), matching the PyTorch module.
    `u` are uniform(0,1) draws of shape (repeat, p); only needed if training.
    """
    assert tile_p % 128 == 0
    p = scale.shape[0]
    repeat = theta.shape[0]

    # Lane-dense padding of the feature axis.
    if p > tile_p:
        padded_p = _round_up(p, tile_p)
    else:
        padded_p = _round_up(p, 128)
        tile_p = padded_p
    pad = padded_p - p

    scale2d = jnp.pad(scale.astype(jnp.float32), (0, pad)).reshape(1, padded_p)
    logalpha2d = jnp.pad(logalpha.astype(jnp.float32), (0, pad)).reshape(1, padded_p)
    theta_p = jnp.pad(theta.astype(jnp.float32), ((0, 0), (0, pad)))
    gauss_p = jnp.pad(gaussians.astype(jnp.float32), ((0, 0), (0, pad)))

    grid = (padded_p // tile_p,)
    row_spec = pl.BlockSpec((1, tile_p), lambda i: (0, i))
    mat_spec = pl.BlockSpec((repeat, tile_p), lambda i: (0, i))
    compiler_params = pltpu.CompilerParams(dimension_semantics=("parallel",))

    if training:
        assert u is not None and u.shape == (repeat, p)
        u_p = jnp.pad(u.astype(jnp.float32), ((0, 0), (0, pad)))
        kernel = functools.partial(_sns_train_kernel, beta=beta)
        out, z, qz, logq = pl.pallas_call(
            kernel,
            grid=grid,
            in_specs=[row_spec, row_spec, mat_spec, mat_spec, mat_spec],
            out_specs=(mat_spec, mat_spec, row_spec, mat_spec),
            out_shape=(
                jax.ShapeDtypeStruct((repeat, padded_p), jnp.float32),  # out
                jax.ShapeDtypeStruct((repeat, padded_p), jnp.float32),  # z
                jax.ShapeDtypeStruct((1, padded_p), jnp.float32),       # qz
                jax.ShapeDtypeStruct((repeat, padded_p), jnp.float32),  # logq
            ),
            compiler_params=compiler_params,
        )(scale2d, logalpha2d, u_p, theta_p, gauss_p)
        z = z[:, :p]
    else:
        kernel = functools.partial(_sns_eval_kernel, beta=beta)
        out, z1, qz, logq = pl.pallas_call(
            kernel,
            grid=grid,
            in_specs=[row_spec, row_spec, mat_spec, mat_spec],
            out_specs=(mat_spec, row_spec, row_spec, mat_spec),
            out_shape=(
                jax.ShapeDtypeStruct((repeat, padded_p), jnp.float32),  # out
                jax.ShapeDtypeStruct((1, padded_p), jnp.float32),       # z (det.)
                jax.ShapeDtypeStruct((1, padded_p), jnp.float32),       # qz
                jax.ShapeDtypeStruct((repeat, padded_p), jnp.float32),  # logq
            ),
            compiler_params=compiler_params,
        )(scale2d, logalpha2d, theta_p, gauss_p)
        z = jnp.broadcast_to(z1[:, :p], (repeat, p))

    out = out[:, :p]
    qz = qz[0, :p]
    logq = logq[:, :p]
    return out, theta, logq, logdet, z, qz


def _reference(scale, logalpha, theta, gaussians, u, training, beta=0.9):
    """Pure-jnp reference matching the PyTorch module formulas exactly."""
    zeta = jnp.exp(scale) + 1.0
    gamma = -(zeta - 1.0)
    gzl = jnp.log(-gamma / zeta)
    qz = jax.nn.sigmoid(logalpha - beta * gzl)
    if training:
        s = jax.nn.sigmoid((jnp.log(u / (1.0 - u)) + logalpha) / beta)
        z = jnp.clip((zeta - gamma) * s + gamma, 0.0, 1.0)
    else:
        z = jnp.broadcast_to(
            jnp.clip(jax.nn.sigmoid(logalpha) * (zeta - gamma) + gamma, 0.0, 1.0),
            u.shape)
    out = z * theta
    logq = -0.5 * jnp.log(2.0 * jnp.pi) - gaussians ** 2 / 2.0
    return out, logq, z, qz


if __name__ == "__main__":
    # Module __init__: p features, scale = -0.0*ones(p), logalpha = log(0.1/0.9)*ones(p)
    P = 96          # deliberately not a multiple of 128 to exercise padding
    REPEAT = 8

    key = jax.random.PRNGKey(0)
    k_gauss, k_u = jax.random.split(key)

    scale_param = jnp.zeros((P,), dtype=jnp.float32)
    logalpha = jnp.full((P,), math.log(0.1 / 0.9), dtype=jnp.float32)

    # TODO(synk): FlowAlternative (the slab / alternative_sampler) is not
    # defined in the spec; stand in with an identity flow over standard
    # normals: theta = gaussians, logdet = 0.
    gaussians = jax.random.normal(k_gauss, (REPEAT, P), dtype=jnp.float32)
    theta = gaussians
    logdet = jnp.zeros((REPEAT,), dtype=jnp.float32)
    u = jax.random.uniform(k_u, (REPEAT, P), dtype=jnp.float32)

    # ---- training path ----
    out, theta_o, logq, logdet_o, z, qz = spike_and_slab_forward(
        scale_param, logalpha, theta, gaussians, logdet, u, training=True)
    jax.block_until_ready((out, logq, z, qz))

    ref_out, ref_logq, ref_z, ref_qz = _reference(
        scale_param, logalpha, theta, gaussians, u, True)

    assert out.shape == (REPEAT, P) and z.shape == (REPEAT, P)
    assert qz.shape == (P,) and logq.shape == (REPEAT, P)
    np.testing.assert_allclose(np.asarray(z), np.asarray(ref_z), rtol=1e-5, atol=1e-5)
    np.testing.assert_allclose(np.asarray(out), np.asarray(ref_out), rtol=1e-5, atol=1e-5)
    np.testing.assert_allclose(np.asarray(qz), np.asarray(ref_qz), rtol=1e-5, atol=1e-5)
    np.testing.assert_allclose(np.asarray(logq), np.asarray(ref_logq), rtol=1e-5, atol=1e-5)
    assert bool(jnp.all((z >= 0.0) & (z <= 1.0)))
    assert bool(jnp.all((qz > 0.0) & (qz < 1.0)))

    # ---- eval path ----
    out_e, _, logq_e, _, z_e, qz_e = spike_and_slab_forward(
        scale_param, logalpha, theta, gaussians, logdet, u, training=False)
    jax.block_until_ready((out_e, logq_e, z_e, qz_e))

    ref_out_e, ref_logq_e, ref_z_e, ref_qz_e = _reference(
        scale_param, logalpha, theta, gaussians, u, False)
    assert z_e.shape == (REPEAT, P)
    np.testing.assert_allclose(np.asarray(z_e), np.asarray(ref_z_e), rtol=1e-5, atol=1e-5)
    np.testing.assert_allclose(np.asarray(out_e), np.asarray(ref_out_e), rtol=1e-5, atol=1e-5)
    np.testing.assert_allclose(np.asarray(qz_e), np.asarray(ref_qz_e), rtol=1e-5, atol=1e-5)
    np.testing.assert_allclose(np.asarray(logq_e), np.asarray(ref_logq_e), rtol=1e-5, atol=1e-5)

    print("KERNEL_OK")
</pallas_src>

<mosaic_0001>
module attributes {stable_mosaic.version = 11 : i64} {
  func.func @_sns_train_kernel(%arg0: i32, %arg1: memref<1x128xf32, #tpu.memory_space<vmem>>, %arg2: memref<1x128xf32, #tpu.memory_space<vmem>>, %arg3: memref<8x128xf32, #tpu.memory_space<vmem>>, %arg4: memref<8x128xf32, #tpu.memory_space<vmem>>, %arg5: memref<8x128xf32, #tpu.memory_space<vmem>>, %arg6: memref<8x128xf32, #tpu.memory_space<vmem>>, %arg7: memref<8x128xf32, #tpu.memory_space<vmem>>, %arg8: memref<1x128xf32, #tpu.memory_space<vmem>>, %arg9: memref<8x128xf32, #tpu.memory_space<vmem>>) attributes {dimension_semantics = [#tpu.dimension_semantics<parallel>], iteration_bounds = array<i64: 1>, scalar_prefetch = 0 : i64, scratch_operands = 0 : i64, tpu.core_type = #tpu.core_type<tc>, window_params = [{transform_indices = @transform_0, window_bounds = array<i64: 1, 128>}, {transform_indices = @transform_1, window_bounds = array<i64: 1, 128>}, {transform_indices = @transform_2, window_bounds = array<i64: 8, 128>}, {transform_indices = @transform_3, window_bounds = array<i64: 8, 128>}, {transform_indices = @transform_4, window_bounds = array<i64: 8, 128>}, {transform_indices = @transform_5, window_bounds = array<i64: 8, 128>}, {transform_indices = @transform_6, window_bounds = array<i64: 8, 128>}, {transform_indices = @transform_7, window_bounds = array<i64: 1, 128>}, {transform_indices = @transform_8, window_bounds = array<i64: 8, 128>}]} {
    %c0 = arith.constant 0 : index
    %c0_0 = arith.constant 0 : index
    %0 = vector.load %arg1[%c0, %c0_0] : memref<1x128xf32, #tpu.memory_space<vmem>>, vector<1x128xf32>
    %c0_1 = arith.constant 0 : index
    %c0_2 = arith.constant 0 : index
    %1 = vector.load %arg2[%c0_1, %c0_2] : memref<1x128xf32, #tpu.memory_space<vmem>>, vector<1x128xf32>
    %2 = math.exp %0 : vector<1x128xf32>
    %cst = arith.constant 0.000000e+00 : f32
    %3 = vector.broadcast %cst : f32 to vector<1x128xf32>
    %4 = arith.subf %3, %2 : vector<1x128xf32>
    %cst_3 = arith.constant 2.000000e+00 : f32
    %5 = vector.broadcast %cst_3 : f32 to vector<1x128xf32>
    %6 = arith.mulf %5, %2 : vector<1x128xf32>
    %cst_4 = arith.constant 1.000000e+00 : f32
    %7 = vector.broadcast %cst_4 : f32 to vector<1x128xf32>
    %8 = arith.addf %6, %7 : vector<1x128xf32>
    %cst_5 = arith.constant 0.000000e+00 : f32
    %9 = vector.broadcast %cst_5 : f32 to vector<1x128xf32>
    %10 = arith.subf %9, %0 : vector<1x128xf32>
    %cst_6 = arith.constant 0.000000e+00 : f32
    %11 = vector.broadcast %cst_6 : f32 to vector<1x128xf32>
    %12 = arith.maximumf %10, %11 : vector<1x128xf32>
    %13 = vector.broadcast %cst_6 : f32 to vector<1x128xf32>
    %14 = arith.subf %10, %13 : vector<1x128xf32>
    %15 = arith.cmpf one, %14, %14 : vector<1x128xf32>
    %16 = vector.broadcast %cst_6 : f32 to vector<1x128xf32>
    %17 = arith.addf %10, %16 : vector<1x128xf32>
    %18 = math.absf %14 : vector<1x128xf32>
    %cst_7 = arith.constant 0.000000e+00 : f32
    %19 = vector.broadcast %cst_7 : f32 to vector<1x128xf32>
    %20 = arith.subf %19, %18 : vector<1x128xf32>
    %21 = math.exp %20 : vector<1x128xf32>
    %22 = math.log1p %21 : vector<1x128xf32>
    %23 = arith.addf %12, %22 : vector<1x128xf32>
    %24 = arith.select %15, %17, %23 : vector<1x128xi1>, vector<1x128xf32>
    %cst_8 = arith.constant 0.000000e+00 : f32
    %25 = vector.broadcast %cst_8 : f32 to vector<1x128xf32>
    %26 = arith.subf %25, %24 : vector<1x128xf32>
    %cst_9 = arith.constant 0.899999976 : f32
    %27 = vector.broadcast %cst_9 : f32 to vector<1x128xf32>
    %28 = arith.mulf %27, %26 : vector<1x128xf32>
    %29 = arith.subf %1, %28 : vector<1x128xf32>
    %30 = arith.negf %29 : vector<1x128xf32>
    %31 = math.exp %30 : vector<1x128xf32>
    %cst_10 = arith.constant 1.000000e+00 : f32
    %32 = vector.broadcast %cst_10 : f32 to vector<1x128xf32>
    %33 = arith.addf %32, %31 : vector<1x128xf32>
    %34 = arith.divf %32, %33 : vector<1x128xf32>
    %c0_11 = arith.constant 0 : index
    %c0_12 = arith.constant 0 : index
    %35 = vector.load %arg8[%c0_11, %c0_12] : memref<1x128xf32, #tpu.memory_space<vmem>>, vector<1x128xf32>
    tpu.vector_store %arg8[%c0_11, %c0_12], %34 {strides = array<i32>} : memref<1x128xf32, #tpu.memory_space<vmem>>, vector<1x128xf32>,
    %c0_13 = arith.constant 0 : index
    %c0_14 = arith.constant 0 : index
    %36 = vector.load %arg3[%c0_13, %c0_14] : memref<8x128xf32, #tpu.memory_space<vmem>>, vector<8x128xf32>
    %37 = math.log %36 : vector<8x128xf32>
    %cst_15 = arith.constant 0.000000e+00 : f32
    %38 = vector.broadcast %cst_15 : f32 to vector<8x128xf32>
    %39 = arith.subf %38, %36 : vector<8x128xf32>
    %40 = math.log1p %39 : vector<8x128xf32>
    %41 = arith.subf %37, %40 : vector<8x128xf32>
    %42 = vector.broadcast %1 : vector<1x128xf32> to vector<8x128xf32>
    %43 = arith.addf %41, %42 : vector<8x128xf32>
    %cst_16 = arith.constant 1.11111116 : f32
    %44 = vector.broadcast %cst_16 : f32 to vector<8x128xf32>
    %45 = arith.mulf %43, %44 : vector<8x128xf32>
    %46 = arith.negf %45 : vector<8x128xf32>
    %47 = math.exp %46 : vector<8x128xf32>
    %cst_17 = arith.constant 1.000000e+00 : f32
    %48 = vector.broadcast %cst_17 : f32 to vector<8x128xf32>
    %49 = arith.addf %48, %47 : vector<8x128xf32>
    %50 = arith.divf %48, %49 : vector<8x128xf32>
    %51 = vector.broadcast %8 : vector<1x128xf32> to vector<8x128xf32>
    %52 = arith.mulf %51, %50 : vector<8x128xf32>
    %53 = vector.broadcast %4 : vector<1x128xf32> to vector<8x128xf32>
    %54 = arith.addf %52, %53 : vector<8x128xf32>
    %cst_18 = arith.constant 0.000000e+00 : f32
    %cst_19 = arith.constant 1.000000e+00 : f32
    %55 = vector.broadcast %cst_18 : f32 to vector<8x128xf32>
    %56 = arith.maximumf %55, %54 : vector<8x128xf32>
    %57 = vector.broadcast %cst_19 : f32 to vector<8x128xf32>
    %58 = arith.minimumf %57, %56 : vector<8x128xf32>
    %c0_20 = arith.constant 0 : index
    %c0_21 = arith.constant 0 : index
    %59 = vector.load %arg7[%c0_20, %c0_21] : memref<8x128xf32, #tpu.memory_space<vmem>>, vector<8x128xf32>
    tpu.vector_store %arg7[%c0_20, %c0_21], %58 {strides = array<i32>} : memref<8x128xf32, #tpu.memory_space<vmem>>, vector<8x128xf32>,
    %c0_22 = arith.constant 0 : index
    %c0_23 = arith.constant 0 : index
    %60 = vector.load %arg4[%c0_22, %c0_23] : memref<8x128xf32, #tpu.memory_space<vmem>>, vector<8x128xf32>
    %61 = arith.mulf %58, %60 : vector<8x128xf32>
    %c0_24 = arith.constant 0 : index
    %c0_25 = arith.constant 0 : index
    %62 = vector.load %arg6[%c0_24, %c0_25] : memref<8x128xf32, #tpu.memory_space<vmem>>, vector<8x128xf32>
    tpu.vector_store %arg6[%c0_24, %c0_25], %61 {strides = array<i32>} : memref<8x128xf32, #tpu.memory_space<vmem>>, vector<8x128xf32>,
    %c0_26 = arith.constant 0 : index
    %c0_27 = arith.constant 0 : index
    %63 = vector.load %arg5[%c0_26, %c0_27] : memref<8x128xf32, #tpu.memory_space<vmem>>, vector<8x128xf32>
    %64 = arith.mulf %63, %63 : vector<8x128xf32>
    %cst_28 = arith.constant 5.000000e-01 : f32
    %65 = vector.broadcast %cst_28 : f32 to vector<8x128xf32>
    %66 = arith.mulf %65, %64 : vector<8x128xf32>
    %cst_29 = arith.constant -0.918938517 : f32
    %67 = vector.broadcast %cst_29 : f32 to vector<8x128xf32>
    %68 = arith.subf %67, %66 : vector<8x128xf32>
    %c0_30 = arith.constant 0 : index
    %c0_31 = arith.constant 0 : index
    %69 = vector.load %arg9[%c0_30, %c0_31] : memref<8x128xf32, #tpu.memory_space<vmem>>, vector<8x128xf32>
    tpu.vector_store %arg9[%c0_30, %c0_31], %68 {strides = array<i32>} : memref<8x128xf32, #tpu.memory_space<vmem>>, vector<8x128xf32>,
    return
  }
  func.func @transform_0(%arg0: i32) -> (i32, i32) {
    %c0_i32 = arith.constant 0 : i32
    %c0_i32_0 = arith.constant 0 : i32
    return %c0_i32, %arg0 : i32, i32
  }
  func.func @transform_1(%arg0: i32) -> (i32, i32) {
    %c0_i32 = arith.constant 0 : i32
    %c0_i32_0 = arith.constant 0 : i32
    return %c0_i32, %arg0 : i32, i32
  }
  func.func @transform_2(%arg0: i32) -> (i32, i32) {
    %c0_i32 = arith.constant 0 : i32
    %c0_i32_0 = arith.constant 0 : i32
    return %c0_i32, %arg0 : i32, i32
  }
  func.func @transform_3(%arg0: i32) -> (i32, i32) {
    %c0_i32 = arith.constant 0 : i32
    %c0_i32_0 = arith.constant 0 : i32
    return %c0_i32, %arg0 : i32, i32
  }
  func.func @transform_4(%arg0: i32) -> (i32, i32) {
    %c0_i32 = arith.constant 0 : i32
    %c0_i32_0 = arith.constant 0 : i32
    return %c0_i32, %arg0 : i32, i32
  }
  func.func @transform_5(%arg0: i32) -> (i32, i32) {
    %c0_i32 = arith.constant 0 : i32
    %c0_i32_0 = arith.constant 0 : i32
    return %c0_i32, %arg0 : i32, i32
  }
  func.func @transform_6(%arg0: i32) -> (i32, i32) {
    %c0_i32 = arith.constant 0 : i32
    %c0_i32_0 = arith.constant 0 : i32
    return %c0_i32, %arg0 : i32, i32
  }
  func.func @transform_7(%arg0: i32) -> (i32, i32) {
    %c0_i32 = arith.constant 0 : i32
    %c0_i32_0 = arith.constant 0 : i32
    return %c0_i32, %arg0 : i32, i32
  }
  func.func @transform_8(%arg0: i32) -> (i32, i32) {
    %c0_i32 = arith.constant 0 : i32
    %c0_i32_0 = arith.constant 0 : i32
    return %c0_i32, %arg0 : i32, i32
  }
}

</mosaic_0001>

<bundles_post_ra>
// kernel: tpu_custom_call.1
= control target key start
LH: loop header
LB: loop body
LE: loop exit
PB: predicated region body
PF: predicated region fallthrough
CT: control target
= control target key end

     0   :  { %14 = vsyncpa [#allocation3], 0  ;;  %s548_s0 = inlined_call_operand.hbm [shape: f32[1,128], index: 0, kind: input, shape index: {}]   ;;  %s549_s1 = inlined_call_operand.vmem [shape: f32[1,128], index: 1, kind: input, shape index: {}]   ;;  %s550_s2 = inlined_call_operand.hbm [shape: f32[8,128], index: 2, kind: input, shape index: {}]   ;;  %s551_s3 = inlined_call_operand.vmem [shape: f32[8,128], index: 3, kind: input, shape index: {}]   ;;  %s552_s4 = inlined_call_operand.hbm [shape: f32[8,128], index: 4, kind: input, shape index: {}]   ;;  %s553_s5 = inlined_call_operand.hbm [shape: f32[8,128], index: 5, kind: output, shape index: {0}]   ;;  %s554_s6 = inlined_call_operand.hbm [shape: f32[8,128], index: 6, kind: output, shape index: {1}]   ;;  %s555_s7 = inlined_call_operand.hbm [shape: f32[1,128], index: 7, kind: output, shape index: {2}]   ;;  %s556_s8 = inlined_call_operand.hbm [shape: f32[8,128], index: 8, kind: output, shape index: {3}]  }
   0x1   :  { %15 = vsyncpa [#allocation6], 0 }
   0x2   :  { %16 = vsyncpa [#allocation4], 0 }
   0x3   :  { %17 = vsyncpa [#allocation10], 0 }
   0x4   :  { %18 = vsyncpa [#allocation13], 0  ;;  %s399_s27 = smov [#allocation5]   ;;  %s400_s29 = smov [#allocation2]  }
   0x5   :  { %s37_s28 = sshll.u32 %s399_s27, 4  ;;  %s25_s30 = sshll.u32 %s400_s29, 4  ;;  %s38_s28 = int_to_ptr.vmem [resolvable:$true] %s37_s28  ;;  %s26_s30 = int_to_ptr.vmem [resolvable:$true] %s25_s30 }
   0x6   :  { %s235_s11 = scalar_lea.hbm %s550_s2, 128 }
   0x7   :  { %p236_p0 = scmp.ne.s32.totalorder %s550_s2, %s235_s11  ;;  %p239_p1 = scmp.lt.u32.totalorder %s235_s11, %s550_s2 }
   0x9   :  { %p241_p2 = pnand %p239_p1, %p236_p0 }
   0xb   :  { %244 = shalt.err (!%p241_p2)
}
   0xc   :  { %s245_s16 = scalar_lea.vmem %s38_s28, 128  ;;  %p250_p4 = scmp.lt.s32.totalorder %s38_s28, %s38_s28 }
   0xd   :  { %p246_p3 = scmp.ne.s32.totalorder %s38_s28, %s245_s16  ;;  %p251_p5 = scmp.lt.s32.totalorder %s245_s16, %s245_s16 }
   0xf   :  { %p252_p6 = por %p251_p5, %p250_p4 }
  0x11   :  { %p253_p7 = pnand %p252_p6, %p246_p3 }
  0x13   :  { %256 = shalt.err (!%p253_p7)
}
  0x14   :  { %40 = dma.hbm_to_vmem [thread:$0]  %s550_s2, 128, %s38_s28, [#allocation6]  }
  0x15   :  { %s257_s21 = scalar_lea.hbm %s548_s0, 16 }
  0x16   :  { %p258_p8 = scmp.ne.s32.totalorder %s548_s0, %s257_s21  ;;  %p261_p9 = scmp.lt.u32.totalorder %s257_s21, %s548_s0 }
  0x18   :  { %p263_p10 = pnand %p261_p9, %p258_p8 }
  0x1a   :  { %266 = shalt.err (!%p263_p10)
}
  0x1b   :  { %s267_s26 = scalar_lea.vmem %s26_s30, 16  ;;  %s271_s27 = scalar_lea.vmem %s26_s30, 32 }
  0x1c   :  { %p268_p11 = scmp.ne.s32.totalorder %s26_s30, %s267_s26  ;;  %p272_p12 = scmp.lt.s32.totalorder %s26_s30, %s26_s30 }
  0x1d   :  { %p273_p13 = scmp.lt.s32.totalorder %s271_s27, %s267_s26 }
  0x1f   :  { %p274_p0 = por %p273_p13, %p272_p12 }
  0x21   :  { %p275_p1 = pnand %p274_p0, %p268_p11 }
  0x23   :  { %278 = shalt.err (!%p275_p1)
}
  0x24   :  { %28 = dma.hbm_to_vmem [thread:$0]  %s548_s0, 16, %s26_s30, [#allocation3]  }
  0x25   :  { %s401_s29 = smov [#allocation7]   ;;  %s279_s12 = scalar_lea.hbm %s552_s4, 128 }
  0x26   :  { %s49_s9 = sshll.u32 %s401_s29, 4  ;;  %p280_p2 = scmp.ne.s32.totalorder %s552_s4, %s279_s12  ;;  %s50_s9 = int_to_ptr.vmem [resolvable:$true] %s49_s9 }
  0x27   :  { %p283_p3 = scmp.lt.u32.totalorder %s279_s12, %s552_s4 }
  0x29   :  { %p285_p4 = pnand %p283_p3, %p280_p2 }
  0x2b   :  { %288 = shalt.err (!%p285_p4)
}
  0x2c   :  { %s289_s17 = scalar_lea.vmem %s50_s9, 128  ;;  %p294_p6 = scmp.lt.s32.totalorder %s50_s9, %s50_s9 }
  0x2d   :  { %p290_p5 = scmp.ne.s32.totalorder %s50_s9, %s289_s17  ;;  %p295_p7 = scmp.lt.s32.totalorder %s289_s17, %s289_s17 }
  0x2f   :  { %p296_p8 = por %p295_p7, %p294_p6 }
  0x31   :  { %p297_p9 = pnand %p296_p8, %p290_p5 }
  0x33   :  { %300 = shalt.err (!%p297_p9)
}
  0x34   :  { %52 = dma.hbm_to_vmem [thread:$0]  %s552_s4, 128, %s50_s9, [#allocation6]  }
  0x35   :  { %389 = dma.done.wait [#allocation3], 16  }
  0x36   :  { %390 = vsyncadd [#allocation3], 4294967280 }
  0x37   :  { %391 = dma.done.wait [#allocation6], 256  }
  0x38   :  { %392 = vsyncadd [#allocation6], 4294967040  ;;  %v62_v0 = vld [vmem:[#allocation2] sm:$0x1]  ;;  %v98_v1 = vld [vmem:[#allocation5] sm:$0xff]  ;;  %s402_s18 = smov [#allocation12]   ;;  %v113_v10 = vlaneseq }
  0x39   :  { %v487_v2 = vsub.f32 0.0, %v62_v0  ;;  %v101_v3 = vsub.f32 0.0, %v98_v1  ;;  %v146_v4 = vld [vmem:[#allocation7] sm:$0xff]  ;;  %217 = vlog2.f32 %v98_v1  ;;  %s187_s19 = sshll.u32 %s402_s18, 4  ;;  %s188_s19 = int_to_ptr.vmem [resolvable:$true] %s187_s19 }
  0x3a   :  { %v147_v5 = vmul.f32 %v146_v4, %v146_v4  ;;  %v114_v14 = vshrl.u32 %v113_v10, 7  ;;  %s301_s4 = scalar_lea.vmem %s188_s19, 128  ;;  %p306_p11 = scmp.lt.s32.totalorder %s188_s19, %s188_s19 }
  0x3b   :  { %v73_v6 = vand.u32 2147483647, %v487_v2  ;;  %v102_v7 = vadd.f32 1.0, %v101_v3  ;;  %v105_v11 = vmul.f32 -0.5, %v101_v3  ;;  %p302_p10 = scmp.ne.s32.totalorder %s188_s19, %s301_s4  ;;  %p307_p12 = scmp.lt.s32.totalorder %s301_s4, %s301_s4 }
  0x3c   :  { %v148_v8 = vmul.f32 0.5, %v147_v5 }
  0x3d   :  { %v74_v9 = vsub.f32 0.0, %v73_v6  ;;  %219 = vlog2.f32 %v102_v7  ;;  %p308_p13 = por %p307_p12, %p306_p11 }
  0x3e   :  { %v149_v12 = vsub.f32 -0.9189385, %v148_v8 }
  0x3f   :  { %v75_v13 = vmul.f32 1.442695, %v74_v9  ;;  %p309_p0 = pnand %p308_p13, %p302_p10 }
  0x40   :  { %150 = vst [vmem:[#allocation12] sm:$0xff] %v149_v12 }
  0x41   :  { %221 = vpow2.f32 %v75_v13 }
  0x42   :  { %312 = shalt.err (!%p309_p0)
}
  0x43   :  { %s313_s22 = scalar_lea.hbm %s556_s8, 128 }
  0x44   :  { %p314_p1 = scmp.ne.s32.totalorder %s556_s8, %s313_s22  ;;  %p317_p2 = scmp.lt.u32.totalorder %s313_s22, %s556_s8 }
  0x46   :  { %p319_p3 = pnand %p317_p2, %p314_p1 }
  0x48   :  { %322 = shalt.err (!%p319_p3)
}
  0x49   :  { %190 = dma.vmem_to_hbm [thread:$0]  %s188_s19, 128, %s556_s8, [#allocation13]   ;;  %v106_v15 = vadd.f32 1.0, %v105_v11  ;;  %v108_v16 = vand.u32 2147483647, %v101_v3  ;;  %v218_v17 = vpop.eup %217  ;;  %v115_v18 = vsub.s32 0, %v114_v14  ;;  %vm71_vm2 = vcmp.ne.f32.partialorder %v487_v2, %v487_v2 }
  0x4a   :  { %v63_v19 = vld [vmem:[%s549_s1] sm:$0x1]  ;;  %v220_v21 = vpop.eup %219  ;;  %v100_v22 = vmul.f32 0.6931472, %v218_v17  ;;  %v64_v30 = vmul.f32 1.442695, %v62_v0 }
  0x4b   :  { %v107_v20 = vmul.f32 %v106_v15, %v101_v3  ;;  %vm109_vm0 = vcmp.lt.f32.partialorder %v108_v16, 0.0004427343  ;;  %v104_v23 = vmul.f32 0.6931472, %v220_v21  ;;  %v116_v24 = vrot.slane %v63_v19, %v115_v18  ;;  %v222_v26 = vpop.eup %221  ;;  %s403_s1 = smov [#allocation9]   ;;  %v143_v59 = vld [vmem:[%s551_s3] sm:$0xff] }
  0x4c   :  { %v77_v28 = vadd.f32 1.0, %v222_v26  ;;  %v80_v32 = vmul.f32 -0.5, %v222_v26  ;;  %v83_v35 = vand.u32 2147483647, %v222_v26  ;;  %v70_v38 = vmax.f32 %v487_v2, 0.0  ;;  %s167_s8 = sshll.u32 %s403_s1, 4  ;;  %s168_s8 = int_to_ptr.vmem [resolvable:$true] %s167_s8 }
  0x4d   :  { %v110_v25 = vsel %vm109_vm0, %v107_v20, %v104_v23  ;;  %s404_s11 = smov [#allocation8]   ;;  %s323_s13 = scalar_lea.vmem %s168_s8, 128 }
  0x4e   :  { %v111_v27 = vsub.f32 %v100_v22, %v110_v25  ;;  %223 = vlog2.f32 %v77_v28  ;;  %v81_v34 = vadd.f32 1.0, %v80_v32  ;;  %vm84_vm1 = vcmp.lt.f32.partialorder %v83_v35, 0.0004427343  ;;  %s157_s12 = sshll.u32 %s404_s11, 4  ;;  %p324_p4 = scmp.ne.s32.totalorder %s168_s8, %s323_s13  ;;  %s158_s12 = int_to_ptr.vmem [resolvable:$true] %s157_s12 }
  0x4f   :  { %225 = vpow2.f32 %v64_v30  ;;  %p328_p5 = scmp.lt.s32.totalorder %s168_s8, %s168_s8  ;;  %p329_p6 = scmp.lt.s32.totalorder %s323_s13, %s323_s13 }
  0x50   :  { %v118_v29 = vadd.f32 %v116_v24, %v111_v27  ;;  %v82_v36 = vmul.f32 %v222_v26, %v81_v34 }
  0x51   :  { %p330_p7 = por %p329_p6, %p328_p5 }
  0x52   :  { %v209_v31 = vmul.f32 -1.1111112, %v118_v29 }
  0x53   :  { %p331_p8 = pnand %p330_p7, %p324_p4 }
  0x54   :  { %v121_v33 = vmul.f32 1.442695, %v209_v31 }
  0x56   :  { %227 = vpow2.f32 %v121_v33 }
  0x58   :  { %v224_v37 = vpop.eup %223 }
  0x59   :  { %v79_v39 = vmul.f32 0.6931472, %v224_v37  ;;  %v226_v41 = vpop.eup %225 }
  0x5a   :  { %v67_v46 = vmul.f32 2.0, %v226_v41  ;;  %v66_v51 = vsub.f32 0.0, %v226_v41 }
  0x5b   :  { %v85_v40 = vsel %vm84_vm1, %v82_v36, %v79_v39 }
  0x5c   :  { %v86_v42 = vadd.f32 %v85_v40, %v70_v38  ;;  %v68_v49 = vadd.f32 1.0, %v67_v46  ;;  %v137_v54 = vrot.slane %v66_v51, %v115_v18 }
  0x5e   :  { %v87_v45 = vsel %vm71_vm2, %v487_v2, %v86_v42  ;;  %v130_v53 = vrot.slane %v68_v49, %v115_v18 }
  0x5f   :  { %v88_v47 = vsub.f32 0.0, %v87_v45 }
  0x60   :  { %v228_v43 = vpop.eup %227 }
  0x61   :  { %v123_v44 = vadd.f32 1.0, %v228_v43  ;;  %v89_v48 = vmul.f32 0.9, %v88_v47 }
  0x63   :  { %229 = vrcp.f32 %v123_v44  ;;  %v90_v50 = vsub.f32 %v63_v19, %v89_v48 }
  0x65   :  { %v208_v52 = vmul.f32 -1.442695, %v90_v50 }
  0x67   :  { %231 = vpow2.f32 %v208_v52 }
  0x6d   :  { %v230_v55 = vpop.eup %229 }
  0x6e   :  { %v132_v56 = vmul.f32 %v230_v55, %v130_v53 }
  0x70   :  { %v139_v57 = vadd.f32 %v137_v54, %v132_v56 }
  0x71   :  { %v232_v60 = vpop.eup %231 }
  0x72   :  { %v140_v58 = vmax.f32 %v139_v57, 0.0  ;;  %v94_v62 = vadd.f32 1.0, %v232_v60 }
  0x74   :  { %v141_v61 = vmin.f32 %v140_v58, 1.0  ;;  %233 = vrcp.f32 %v94_v62 }
  0x76   :  { %142 = vst [vmem:[#allocation9] sm:$0xff] %v141_v61  ;;  %v144_v63 = vmul.f32 %v143_v59, %v141_v61 }
  0x77   :  { %334 = shalt.err (!%p331_p8)
}
  0x78   :  { %s335_s3 = scalar_lea.hbm %s554_s6, 128 }
  0x79   :  { %p336_p9 = scmp.ne.s32.totalorder %s554_s6, %s335_s3  ;;  %p339_p10 = scmp.lt.u32.totalorder %s335_s3, %s554_s6 }
  0x7b   :  { %p341_p11 = pnand %p339_p10, %p336_p9 }
  0x7d   :  { %344 = shalt.err (!%p341_p11)
}
  0x7e   :  { %170 = dma.vmem_to_hbm [thread:$0]  %s168_s8, 128, %s554_s6, [#allocation10]   ;;  %145 = vst [vmem:[#allocation8] sm:$0xff] %v144_v63 }
  0x7f   :  { %s345_s4 = scalar_lea.vmem %s158_s12, 128  ;;  %p350_p13 = scmp.lt.s32.totalorder %s158_s12, %s158_s12 }
  0x80   :  { %p346_p12 = scmp.ne.s32.totalorder %s158_s12, %s345_s4  ;;  %p351_p0 = scmp.lt.s32.totalorder %s345_s4, %s345_s4 }
  0x82   :  { %p352_p1 = por %p351_p0, %p350_p13 }
  0x84   :  { %p353_p2 = pnand %p352_p1, %p346_p12 }
  0x86   :  { %356 = shalt.err (!%p353_p2)
}
  0x87   :  { %s357_s22 = scalar_lea.hbm %s553_s5, 128 }
  0x88   :  { %p358_p3 = scmp.ne.s32.totalorder %s553_s5, %s357_s22  ;;  %p361_p4 = scmp.lt.u32.totalorder %s357_s22, %s553_s5 }
  0x8a   :  { %p363_p5 = pnand %p361_p4, %p358_p3 }
  0x8c   :  { %366 = shalt.err (!%p363_p5)
}
  0x8d   :  { %160 = dma.vmem_to_hbm [thread:$0]  %s158_s12, 128, %s553_s5, [#allocation4]   ;;  %v234_v0 = vpop.eup %233 }
  0x8e   :  { %s405_s2 = smov [#allocation11]   ;;  %97 = vst [vmem:[#allocation11] sm:$0x1] %v234_v0 }
  0x8f   :  { %s177_s28 = sshll.u32 %s405_s2, 4  ;;  %s178_s28 = int_to_ptr.vmem [resolvable:$true] %s177_s28 }
  0x90   :  { %s367_s29 = scalar_lea.vmem %s178_s28, 16  ;;  %s371_s1 = scalar_lea.vmem %s178_s28, 32 }
  0x91   :  { %p368_p6 = scmp.ne.s32.totalorder %s178_s28, %s367_s29  ;;  %p372_p7 = scmp.lt.s32.totalorder %s178_s28, %s178_s28 }
  0x92   :  { %p373_p8 = scmp.lt.s32.totalorder %s371_s1, %s367_s29 }
  0x94   :  { %p374_p9 = por %p373_p8, %p372_p7 }
  0x96   :  { %p375_p10 = pnand %p374_p9, %p368_p6 }
  0x98   :  { %378 = shalt.err (!%p375_p10)
}
  0x99   :  { %s379_s10 = scalar_lea.hbm %s555_s7, 16 }
  0x9a   :  { %p380_p11 = scmp.ne.s32.totalorder %s555_s7, %s379_s10  ;;  %p383_p12 = scmp.lt.u32.totalorder %s379_s10, %s555_s7 }
  0x9c   :  { %p385_p13 = pnand %p383_p12, %p380_p11 }
  0x9e   :  { %388 = shalt.err (!%p385_p13)
}
  0x9f   :  { %180 = dma.vmem_to_hbm [thread:$0]  %s178_s28, 16, %s555_s7, [#allocation10]  }
  0xa0   :  { %393 = dma.done.wait [#allocation4], 128  }
  0xa1   :  { %394 = vsyncadd [#allocation4], 4294967168 }
  0xa2   :  { %395 = dma.done.wait [#allocation10], 144  }
  0xa3   :  { %396 = vsyncadd [#allocation10], 4294967152 }
  0xa4   :  { %397 = dma.done.wait [#allocation13], 128  }
  0xa5   :  { %398 = vsyncadd [#allocation13], 4294967168 }
  0xa6   :  { %203 = vsyncpa [#allocation3], 1 }
  0xa7   :  { %204 = vsyncpa [#allocation6], 1 }
  0xa8   :  { %205 = vsyncpa [#allocation4], 1 }
  0xa9   :  { %206 = vsyncpa [#allocation10], 1 }
  0xaa   :  { %207 = vsyncpa [#allocation13], 1 }

</bundles_post_ra>
